<compile_context>
chip_gen: v7x
topology: tpu7x:2x2x1
jax: 0.10.0
libtpu: 0.0.40
codegen_flags: <defaults>
</compile_context>

<pallas_src>
import jax
import jax.numpy as jnp
from jax.experimental import pallas as pl
from jax.experimental.pallas import tpu as pltpu


_LANE = 128
_SUBLANE = 8


def _round_up(x, m):
    return ((x + m - 1) // m) * m


def _linear_bias_kernel(x_ref, w_ref, b_ref, o_ref):
    # x_ref: [TM, K] bf16 | w_ref: [K, N_pad] bf16 | b_ref: [1, N_pad] f32
    # o_ref: [TM, N_pad] f32
    acc = jnp.dot(x_ref[...], w_ref[...], preferred_element_type=jnp.float32)
    o_ref[...] = (acc + b_ref[...]).astype(o_ref.dtype)


def spectral_norm_weight(w, n_power_iterations=1, eps=1e-12, key=None):
    """Replicates torch.nn.utils.spectral_norm at inference: W / sigma_max(W).

    w: [nb_classes, ft_in] (PyTorch Linear weight layout).
    """
    out_dim, _ = w.shape
    if key is None:
        key = jax.random.PRNGKey(123)
    # TODO(synk): PyTorch keeps `u` as a persistent buffer updated across forward
    # calls; here it is re-derived from a fixed key at parameter-prep time.
    u = jax.random.normal(key, (out_dim,), dtype=w.dtype)
    u = u / jnp.maximum(jnp.linalg.norm(u), eps)

    def body(_, u):
        v = w.T @ u
        v = v / jnp.maximum(jnp.linalg.norm(v), eps)
        u = w @ v
        u = u / jnp.maximum(jnp.linalg.norm(u), eps)
        return u

    u = jax.lax.fori_loop(0, n_power_iterations, body, u)
    v = w.T @ u
    v = v / jnp.maximum(jnp.linalg.norm(v), eps)
    sigma = u @ (w @ v)
    return w / sigma


def prepare_classifier_params(weight, bias, n_power_iterations=1, key=None,
                              compute_dtype=jnp.bfloat16):
    """One-time setup: spectral norm + transpose + lane padding + bf16 cast.

    Returns (w_t_pad [ft_in, N_pad] compute_dtype, bias_pad [1, N_pad] f32, nb_classes).
    """
    nb_classes, ft_in = weight.shape
    w_sn = spectral_norm_weight(weight, n_power_iterations=n_power_iterations, key=key)
    n_pad = _round_up(nb_classes, _LANE)
    w_t_pad = jnp.zeros((ft_in, n_pad), dtype=compute_dtype)
    w_t_pad = w_t_pad.at[:, :nb_classes].set(w_sn.T.astype(compute_dtype))
    b_pad = jnp.zeros((1, n_pad), dtype=jnp.float32)
    b_pad = b_pad.at[0, :nb_classes].set(bias.astype(jnp.float32))
    return w_t_pad, b_pad, nb_classes


def classifier_forward(seq, w_t_pad, b_pad, nb_classes, *, block_m=1024):
    """Hot path. seq: [batch, nodes, ft_in]; w_t_pad: [ft_in, N_pad]; b_pad: [1, N_pad]."""
    batch, nodes, ft_in = seq.shape
    k_dim, n_pad = w_t_pad.shape
    assert k_dim == ft_in
    compute_dtype = w_t_pad.dtype
    out_dtype = seq.dtype

    m = batch * nodes
    x2d = seq.reshape(m, ft_in).astype(compute_dtype)

    # M-tile: big tiles for pipelining/amortization; single rounded-up tile for small M.
    tm = block_m if m >= block_m else _round_up(m, _SUBLANE)
    m_pad = _round_up(m, tm)
    if m_pad != m:
        x2d = jnp.pad(x2d, ((0, m_pad - m), (0, 0)))

    grid = (m_pad // tm,)

    in_itemsize = jnp.dtype(compute_dtype).itemsize
    out_itemsize = jnp.dtype(out_dtype).itemsize
    cost = pl.CostEstimate(
        flops=2 * m_pad * ft_in * n_pad,
        transcendentals=0,
        bytes_accessed=(m_pad * ft_in * in_itemsize
                        + ft_in * n_pad * in_itemsize
                        + n_pad * 4
                        + m_pad * n_pad * out_itemsize),
    )

    out = pl.pallas_call(
        _linear_bias_kernel,
        out_shape=jax.ShapeDtypeStruct((m_pad, n_pad), out_dtype),
        grid_spec=pltpu.PrefetchScalarGridSpec(
            num_scalar_prefetch=0,
            grid=grid,
            in_specs=[
                pl.BlockSpec((tm, ft_in), lambda i: (i, 0)),     # activations, tiled over M
                pl.BlockSpec((ft_in, n_pad), lambda i: (0, 0)),  # weight, resident
                pl.BlockSpec((1, n_pad), lambda i: (0, 0)),      # bias, resident
            ],
            out_specs=pl.BlockSpec((tm, n_pad), lambda i: (i, 0)),
        ),
        compiler_params=pltpu.CompilerParams(
            dimension_semantics=("parallel",),
            vmem_limit_bytes=32 * 1024 * 1024,
        ),
        cost_estimate=cost,
    )(x2d, w_t_pad, b_pad)

    out = out[:m, :nb_classes]
    return out.reshape(batch, nodes, nb_classes)


if __name__ == "__main__":
    # Small shapes consistent with the module: ft_in hidden dim, nb_classes labels.
    batch, nodes, ft_in, nb_classes = 2, 8, 32, 4

    key = jax.random.PRNGKey(0)
    k_x, k_w, k_b, k_u = jax.random.split(key, 4)

    seq = jax.random.normal(k_x, (batch, nodes, ft_in), dtype=jnp.float32)

    # Deterministic parameter init (mimics nn.Linear's uniform(-1/sqrt(ft_in), 1/sqrt(ft_in))).
    bound = 1.0 / (ft_in ** 0.5)
    weight = jax.random.uniform(k_w, (nb_classes, ft_in), dtype=jnp.float32,
                                minval=-bound, maxval=bound)
    bias = jax.random.uniform(k_b, (nb_classes,), dtype=jnp.float32,
                              minval=-bound, maxval=bound)

    # One-time parameter setup (spectral norm + transpose + pad + bf16), hoisted
    # out of the per-call hot path.
    w_t_pad, b_pad, n_cls = prepare_classifier_params(
        weight, bias, n_power_iterations=1, key=k_u)

    out = classifier_forward(seq, w_t_pad, b_pad, n_cls)
    out = jax.block_until_ready(out)

    # Reference with the same bf16-quantized operands and f32 accumulation.
    w_sn = spectral_norm_weight(weight, n_power_iterations=1, key=k_u)
    x_q = seq.astype(jnp.bfloat16).astype(jnp.float32)
    w_q = w_sn.astype(jnp.bfloat16).astype(jnp.float32)
    ref = jnp.einsum("bnk,ck->bnc", x_q, w_q) + bias

    assert out.shape == (batch, nodes, nb_classes)
    assert jnp.allclose(out, ref, atol=1e-4, rtol=1e-4), \
        float(jnp.max(jnp.abs(out - ref)))

    print("KERNEL_OK")
</pallas_src>

<mosaic_0001>
module attributes {stable_mosaic.version = 11 : i64} {
  func.func @_linear_bias_kernel(%arg0: i32, %arg1: memref<16x32xbf16, #tpu.memory_space<vmem>>, %arg2: memref<32x128xbf16, #tpu.memory_space<vmem>>, %arg3: memref<1x128xf32, #tpu.memory_space<vmem>>, %arg4: memref<16x128xf32, #tpu.memory_space<vmem>>) attributes {dimension_semantics = [#tpu.dimension_semantics<parallel>], iteration_bounds = array<i64: 1>, scalar_prefetch = 0 : i64, scratch_operands = 0 : i64, tpu.core_type = #tpu.core_type<tc>, window_params = [{transform_indices = @transform_0, window_bounds = array<i64: 16, 32>}, {pipeline_mode = #tpu.pipeline_mode<synchronous>, transform_indices = @transform_1, window_bounds = array<i64: 32, 128>}, {pipeline_mode = #tpu.pipeline_mode<synchronous>, transform_indices = @transform_2, window_bounds = array<i64: 1, 128>}, {transform_indices = @transform_3, window_bounds = array<i64: 16, 128>}]} {
    %c0 = arith.constant 0 : index
    %c0_0 = arith.constant 0 : index
    %0 = vector.load %arg1[%c0, %c0_0] : memref<16x32xbf16, #tpu.memory_space<vmem>>, vector<16x32xbf16>
    %c0_1 = arith.constant 0 : index
    %c0_2 = arith.constant 0 : index
    %1 = vector.load %arg2[%c0_1, %c0_2] : memref<32x128xbf16, #tpu.memory_space<vmem>>, vector<32x128xbf16>
    %cst = arith.constant dense<0.000000e+00> : vector<16x128xf32>
    %2 = tpu.matmul %0, %1, %cst {dimension_numbers = #tpu.dot_dimension_numbers<[1], [0], [0], [1], [0, 0, 1, 1], [], []>} : vector<16x32xbf16>, vector<32x128xbf16>, vector<16x128xf32> -> vector<16x128xf32>
    %c0_3 = arith.constant 0 : index
    %c0_4 = arith.constant 0 : index
    %3 = vector.load %arg3[%c0_3, %c0_4] : memref<1x128xf32, #tpu.memory_space<vmem>>, vector<1x128xf32>
    %4 = vector.broadcast %3 : vector<1x128xf32> to vector<16x128xf32>
    %5 = arith.addf %2, %4 : vector<16x128xf32>
    %c0_5 = arith.constant 0 : index
    %c0_6 = arith.constant 0 : index
    %6 = vector.load %arg4[%c0_5, %c0_6] : memref<16x128xf32, #tpu.memory_space<vmem>>, vector<16x128xf32>
    tpu.vector_store %arg4[%c0_5, %c0_6], %5 {strides = array<i32>} : memref<16x128xf32, #tpu.memory_space<vmem>>, vector<16x128xf32>,
    return
  }
  func.func @transform_0(%arg0: i32) -> (i32, i32) {
    %c0_i32 = arith.constant 0 : i32
    %c0_i32_0 = arith.constant 0 : i32
    return %arg0, %c0_i32 : i32, i32
  }
  func.func @transform_1(%arg0: i32) -> (i32, i32) {
    %c0_i32 = arith.constant 0 : i32
    %c0_i32_0 = arith.constant 0 : i32
    %c0_i32_1 = arith.constant 0 : i32
    return %c0_i32, %c0_i32_0 : i32, i32
  }
  func.func @transform_2(%arg0: i32) -> (i32, i32) {
    %c0_i32 = arith.constant 0 : i32
    %c0_i32_0 = arith.constant 0 : i32
    %c0_i32_1 = arith.constant 0 : i32
    return %c0_i32, %c0_i32_0 : i32, i32
  }
  func.func @transform_3(%arg0: i32) -> (i32, i32) {
    %c0_i32 = arith.constant 0 : i32
    %c0_i32_0 = arith.constant 0 : i32
    return %arg0, %c0_i32 : i32, i32
  }
}

</mosaic_0001>

<bundles_post_ra>
// kernel: tpu_custom_call.1
= control target key start
LH: loop header
LB: loop body
LE: loop exit
PB: predicated region body
PF: predicated region fallthrough
CT: control target
= control target key end

     0   :  { %8 = vsyncpa [#allocation3], 0  ;;  %s307_s0 = inlined_call_operand.hbm [shape: bf16[16,32], index: 0, kind: input, shape index: {}]   ;;  %s308_s1 = inlined_call_operand.hbm [shape: bf16[32,128], index: 1, kind: input, shape index: {}]   ;;  %s309_s2 = inlined_call_operand.vmem [shape: f32[1,128], index: 2, kind: input, shape index: {}]   ;;  %s310_s3 = inlined_call_operand.hbm [shape: f32[16,128], index: 3, kind: output, shape index: {}]  }
   0x1   :  { %9 = vsyncpa [#allocation6], 0 }
   0x2   :  { %10 = vsyncpa [#allocation4], 0  ;;  %s239_s12 = smov [#allocation2]   ;;  %s167_s16 = scalar_lea.hbm %s307_s0, 128 }
   0x3   :  { %s16_s13 = sshll.u32 %s239_s12, 4  ;;  %p168_p0 = scmp.ne.s32.totalorder %s307_s0, %s167_s16  ;;  %s17_s13 = int_to_ptr.vmem [resolvable:$true] %s16_s13 }
   0x4   :  { %p171_p1 = scmp.lt.u32.totalorder %s167_s16, %s307_s0 }
   0x6   :  { %p173_p2 = pnand %p171_p1, %p168_p0 }
   0x8   :  { %176 = shalt.err (!%p173_p2)
}
   0x9   :  { %s177_s21 = scalar_lea.vmem %s17_s13, 128  ;;  %p182_p4 = scmp.lt.s32.totalorder %s17_s13, %s17_s13 }
   0xa   :  { %p178_p3 = scmp.ne.s32.totalorder %s17_s13, %s177_s21  ;;  %p183_p5 = scmp.lt.s32.totalorder %s177_s21, %s177_s21 }
   0xc   :  { %p184_p6 = por %p183_p5, %p182_p4 }
   0xe   :  { %p185_p7 = pnand %p184_p6, %p178_p3 }
  0x10   :  { %188 = shalt.err (!%p185_p7)
}
  0x11   :  { %s240_s22 = smov 64   ;;  %s241_s23 = smov 4  }
  0x12   :  { %22 = dma.hbm_to_vmem [thread:$0]  %s307_s0, 128, %s17_s13, [#allocation3], %s240_s22, %s240_s22, %s241_s23  }
  0x13   :  { %s242_s26 = smov [#allocation5]   ;;  %s189_s30 = scalar_lea.hbm %s308_s1, 256 }
  0x14   :  { %s28_s27 = sshll.u32 %s242_s26, 4  ;;  %p190_p8 = scmp.ne.s32.totalorder %s308_s1, %s189_s30  ;;  %s29_s27 = int_to_ptr.vmem [resolvable:$true] %s28_s27 }
  0x15   :  { %p193_p9 = scmp.lt.u32.totalorder %s189_s30, %s308_s1 }
  0x17   :  { %p195_p10 = pnand %p193_p9, %p190_p8 }
  0x19   :  { %198 = shalt.err (!%p195_p10)
}
  0x1a   :  { %s199_s8 = scalar_lea.vmem %s29_s27, 256  ;;  %p204_p12 = scmp.lt.s32.totalorder %s29_s27, %s29_s27 }
  0x1b   :  { %p200_p11 = scmp.ne.s32.totalorder %s29_s27, %s199_s8  ;;  %p205_p13 = scmp.lt.s32.totalorder %s199_s8, %s199_s8 }
  0x1d   :  { %p206_p0 = por %p205_p13, %p204_p12 }
  0x1f   :  { %p207_p1 = pnand %p206_p0, %p200_p11 }
  0x21   :  { %210 = shalt.err (!%p207_p1)
}
  0x22   :  { %34 = dma.hbm_to_vmem [thread:$0]  %s308_s1, 256, %s29_s27, [#allocation6], %s240_s22, %s240_s22, %s241_s23  }
  0x23   :  { %233 = dma.done.wait [#allocation3], 128  }
  0x24   :  { %234 = vsyncadd [#allocation3], 4294967168 }
  0x25   :  { %235 = dma.done.wait [#allocation6], 256  }
  0x26   :  { %236 = vsyncadd [#allocation6], 4294967040  ;;  %v243_v0 = vmov 0.0   ;;  %vm244_vm0 = vmmov 0   ;;  %v164_v1 = vld [vmem:[#allocation5] sm:$0xff]   ;;  %v165_v2 = vld [vmem:[#allocation5 + $0x8] sm:$0xff]  }
  0x27   :  { %147 = vmatprep.subr.bf16.mxu0 %v243_v0  ;;  %151 = vmatprep.mubr.msk.bf16.mxu0 %vm244_vm0, %v243_v0  ;;  %v166_v3 = vld [vmem:[#allocation2] sm:$0xff]   ;;  %vm74_vm1 = vcmask 261120   ;;  %s245_s1 = smov [#allocation7]  }
  0x28   :  { %148 = vmatpush3.bf16.msra.mxu0 %v164_v1  ;;  %v139_v4 = vld [vmem:[%s309_s2] ss:$0 sm:$0xff]  ;;  %s126_s12 = sshll.u32 %s245_s1, 4  ;;  %s127_s12 = int_to_ptr.vmem [resolvable:$true] %s126_s12 }
  0x29   :  { %149 = vmatprep.subr.bf16.mxu0 %v243_v0  ;;  %s211_s13 = scalar_lea.vmem %s127_s12, 256  ;;  %p216_p3 = scmp.lt.s32.totalorder %s127_s12, %s127_s12 }
  0x2a   :  { %p212_p2 = scmp.ne.s32.totalorder %s127_s12, %s211_s13  ;;  %p217_p4 = scmp.lt.s32.totalorder %s211_s13, %s211_s13 }
  0x2c   :  { %150 = vmatpush3.bf16.msra.mxu0 %v165_v2  ;;  %p218_p5 = por %p217_p4, %p216_p3 }
  0x2e   :  { %p219_p6 = pnand %p218_p5, %p212_p2 }
  0x2f   :  { %152 = vmatmul.mubr.msk.bf16.vlgmr.msra.gmra.mrb[0].mxu0 %vm74_vm1, %v166_v3 }
 0x102   :  { %v112_v5 = vpop.f32.mrb[0].mxu0 }
 0x103   :  { %v113_v6 = vadd.f32 %v139_v4, %v112_v5  ;;  %v153_v7 = vpop.f32.mrb[1].mxu0 }
 0x104   :  { %v115_v8 = vpop.f32.mrb[2].mxu0 }
 0x105   :  { %119 = vst [vmem:[#allocation7] sm:$0xff] %v113_v6  ;;  %v116_v9 = vadd.f32 %v139_v4, %v115_v8  ;;  %v154_v10 = vpop.f32.mrb[3].mxu0 }
 0x107   :  { %120 = vst [vmem:[#allocation7 + $0x8] sm:$0xff] %v116_v9 }
 0x108   :  { %222 = shalt.err (!%p219_p6)
}
 0x109   :  { %s223_s15 = scalar_lea.hbm %s310_s3, 256 }
 0x10a   :  { %p224_p7 = scmp.ne.s32.totalorder %s310_s3, %s223_s15  ;;  %p227_p8 = scmp.lt.u32.totalorder %s223_s15, %s310_s3 }
 0x10c   :  { %p229_p9 = pnand %p227_p8, %p224_p7 }
 0x10e   :  { %232 = shalt.err (!%p229_p9)
}
 0x10f   :  { %s246_s20 = smov 128   ;;  %s247_s21 = smov 8  }
 0x110   :  { %132 = dma.vmem_to_hbm [thread:$0]  %s127_s12, 256, %s310_s3, [#allocation4], %s246_s20, %s246_s20, %s247_s21  }
 0x111   :  { %237 = dma.done.wait [#allocation4], 256  }
 0x112   :  { %238 = vsyncadd [#allocation4], 4294967040 }
 0x113   :  { %136 = vsyncpa [#allocation3], 1 }
 0x114   :  { %137 = vsyncpa [#allocation6], 1 }
 0x115   :  { %138 = vsyncpa [#allocation4], 1 }

</bundles_post_ra>
